<compile_context>
chip_gen: v7x
topology: tpu7x:2x2x1
jax: 0.10.0
libtpu: 0.0.40
codegen_flags: <defaults>
</compile_context>

<pallas_src>
import functools

import jax
import jax.numpy as jnp
from jax.experimental import pallas as pl
from jax.experimental.pallas import tpu as pltpu

_MIB = 1024 * 1024


def _round_up(x, m):
    return ((x + m - 1) // m) * m


def _vmem_capacity_bytes():
    """Physical VMEM of the local TPU; conservative 64 MiB (v7x-sized) fallback."""
    try:
        info = pltpu.get_tpu_info()
        cap = getattr(info, "vmem_capacity_bytes", None)
        if cap:
            return int(cap)
    except Exception:
        pass
    return 64 * _MIB


def _pick_n_tile(kp, hid_p, itemsize, vmem_cap_bytes):
    """Largest lane-dense output tile whose double-buffered weight slab fits VMEM."""
    budget = min(vmem_cap_bytes - 16 * _MIB, 100 * _MIB)   # honest headroom
    max_tile = 1024 if vmem_cap_bytes >= 96 * _MIB else 512
    per_lane = 2 * 3 * kp * itemsize   # double-buffered weight bytes per output lane
    if per_lane * 128 > budget:
        # TODO(synk): fall back to a K-reduction grid axis with an f32 accumulator.
        raise ValueError(
            f"GRU weight tile at tn=128 needs {per_lane * 128} bytes double-buffered, "
            f"exceeding the VMEM budget of {budget} bytes; use bfloat16 weights or a "
            "K-reduction grid axis.")
    cap = min(max_tile, budget // per_lane, hid_p)
    if hid_p >= 256:
        cap = min(cap, hid_p // 2)     # keep >= 2 blocks so the v7x megacore can split
    cap = max(128, (cap // 128) * 128)
    t = cap
    while t >= 128:
        if hid_p % t == 0:
            return t
        t -= 128
    return 128


def prepare_gru_params(weight_ih, weight_hh, bias_ih, bias_hh, *,
                       weights_dtype=None, vmem_cap_bytes=None):
    """One-time re-layout of torch.nn.GRUCell parameters for the kernel.

    torch layout : weight_ih (3*hid, dim), weight_hh (3*hid, hid),
                   bias_ih / bias_hh (3*hid,), gate order [r, z, n].
    kernel layout: w_bm (n_blocks, 3, Kp, tn)  block-major, gate-major, K-fused
                   (rows [0:dim_p] = input->hidden, rows [dim_p:Kp] = hidden->hidden,
                    zero-padded to dim_p = ceil8(dim), hid_p = ceil128(hid)),
                   b_packed (4, 1, hid_p) = [b_r_ih+b_r_hh, b_z_ih+b_z_hh, b_n_ih, b_n_hh].
    """
    three_hid, dim = weight_ih.shape
    hid = three_hid // 3
    dim_p = _round_up(dim, 8)        # sublane alignment for the fused-K split
    hid_p = _round_up(hid, 128)      # lane-dense output blocks
    kp = dim_p + hid_p

    wdt = jnp.dtype(weights_dtype) if weights_dtype is not None else weight_ih.dtype
    itemsize = jnp.dtype(wdt).itemsize
    if vmem_cap_bytes is None:
        vmem_cap_bytes = _vmem_capacity_bytes()
    tn = _pick_n_tile(kp, hid_p, itemsize, vmem_cap_bytes)
    n_blocks = hid_p // tn

    # Gate-major transposed + zero-padded weights, fused along K = [x ; h].
    w_ih_t = jnp.transpose(weight_ih.reshape(3, hid, dim), (0, 2, 1))   # (3, dim, hid)
    w_hh_t = jnp.transpose(weight_hh.reshape(3, hid, hid), (0, 2, 1))   # (3, hid, hid)
    w_ih_t = jnp.pad(w_ih_t, ((0, 0), (0, dim_p - dim), (0, hid_p - hid)))
    w_hh_t = jnp.pad(w_hh_t, ((0, 0), (0, hid_p - hid), (0, hid_p - hid)))
    w_fused = jnp.concatenate([w_ih_t, w_hh_t], axis=1)                 # (3, Kp, hid_p)
    # Block-major: grid step j DMAs one contiguous (3, Kp, tn) slab from HBM.
    w_bm = jnp.transpose(w_fused.reshape(3, kp, n_blocks, tn), (2, 0, 1, 3))
    w_bm = w_bm.astype(wdt)

    b_ih3 = jnp.pad(bias_ih.reshape(3, hid), ((0, 0), (0, hid_p - hid)))
    b_hh3 = jnp.pad(bias_hh.reshape(3, hid), ((0, 0), (0, hid_p - hid)))
    b_packed = jnp.stack(
        [b_ih3[0] + b_hh3[0], b_ih3[1] + b_hh3[1], b_ih3[2], b_hh3[2]], axis=0
    ).reshape(4, 1, hid_p).astype(jnp.float32)

    meta = dict(dim=dim, hid=hid, dim_p=dim_p, hid_p=hid_p, kp=kp, tn=tn,
                n_blocks=n_blocks, vmem_cap_bytes=int(vmem_cap_bytes))
    return w_bm, b_packed, meta


def _gru_cell_kernel(xh_ref, x_ref, h_ref, w_ref, b_ref, out_ref, *, dim_p):
    """One hid-block of the GRU cell update.

    xh_ref : (1, Kp)       resident [x ; h] row (fused r/z GEMVs)
    x_ref  : (1, dim_p)    resident input row (n gate, input part)
    h_ref  : (1, hid_p)    resident hidden state (n gate hidden part + final blend)
    w_ref  : (3, Kp, tn)   block-major gate-major K-fused weight slab  [r, z, n]
    b_ref  : (4, 1, tn)    packed biases [b_r_sum, b_z_sum, b_in, b_hn]
    out_ref: (1, tn)       new hidden state block
    """
    f32 = jnp.float32
    wdt = w_ref.dtype
    tn = out_ref.shape[-1]

    xh = xh_ref[...].astype(wdt)
    x = x_ref[...].astype(wdt)
    h = h_ref[...].astype(wdt)

    # Fused-K GEMVs with f32 MXU accumulation: r/z come out with input + hidden
    # contributions already summed; the n gate splits the fused K axis at the
    # sublane-aligned dim_p boundary.
    g_r = jnp.dot(xh, w_ref[0], preferred_element_type=f32)
    g_z = jnp.dot(xh, w_ref[1], preferred_element_type=f32)
    w_n = w_ref[2]
    i_n = jnp.dot(x, w_n[:dim_p, :], preferred_element_type=f32)
    h_n = jnp.dot(h, w_n[dim_p:, :], preferred_element_type=f32)

    b_r = b_ref[0].astype(f32)     # pre-summed b_ih_r + b_hh_r
    b_z = b_ref[1].astype(f32)     # pre-summed b_ih_z + b_hh_z
    b_in = b_ref[2].astype(f32)
    b_hn = b_ref[3].astype(f32)

    # Gate math in f32 (EUP sigmoid/tanh), matching torch.nn.GRUCell.
    r = jax.nn.sigmoid(g_r + b_r)
    z = jax.nn.sigmoid(g_z + b_z)
    n = jnp.tanh(i_n + b_in + r * (h_n + b_hn))

    # Per-block slice of the resident h for the final blend (no extra BlockSpec).
    off = pl.multiple_of(pl.program_id(0) * tn, 128)
    h_blk = h_ref[:, pl.ds(off, tn)].astype(f32)
    out_ref[...] = ((1.0 - z) * n + z * h_blk).astype(out_ref.dtype)


@functools.partial(jax.jit, static_argnames=("dim_p", "vmem_limit_bytes"))
def _gru_cell_forward_impl(x, h, w_bm, b_packed, *, dim_p, vmem_limit_bytes):
    n_blocks, _, kp, tn = w_bm.shape
    hid_p = b_packed.shape[-1]
    (dim,) = x.shape
    (hid,) = h.shape

    x_p = jnp.pad(x, (0, dim_p - dim)).reshape(1, dim_p)     # torch.unsqueeze + pad
    h_p = jnp.pad(h, (0, hid_p - hid)).reshape(1, hid_p)
    xh = jnp.concatenate([x_p, h_p], axis=1)                  # (1, Kp)

    w_item = w_bm.dtype.itemsize
    cost = pl.CostEstimate(
        flops=int(2 * kp * 3 * hid_p),
        transcendentals=int(3 * hid_p),
        bytes_accessed=int(3 * kp * hid_p * w_item
                           + (2 * kp + 5 * hid_p) * 4
                           + hid_p * h.dtype.itemsize),
    )

    kernel = functools.partial(_gru_cell_kernel, dim_p=dim_p)
    out = pl.pallas_call(
        kernel,
        out_shape=jax.ShapeDtypeStruct((1, hid_p), h.dtype),
        grid=(n_blocks,),
        in_specs=[
            pl.BlockSpec((1, kp), lambda j: (0, 0)),                 # xh, resident
            pl.BlockSpec((1, dim_p), lambda j: (0, 0)),              # x, resident
            pl.BlockSpec((1, hid_p), lambda j: (0, 0)),              # h, resident
            pl.BlockSpec((None, 3, kp, tn), lambda j: (j, 0, 0, 0)),  # block-major weights
            pl.BlockSpec((4, 1, tn), lambda j: (0, 0, j)),           # packed biases
        ],
        out_specs=pl.BlockSpec((1, tn), lambda j: (0, j)),
        compiler_params=pltpu.CompilerParams(
            dimension_semantics=("parallel",),
            vmem_limit_bytes=vmem_limit_bytes,
        ),
        cost_estimate=cost,
    )(xh, x_p, h_p, w_bm, b_packed)

    return out.reshape(hid_p)[:hid]      # torch.squeeze + drop padding


def gru_cell_forward(x, h, w_bm, b_packed, meta):
    """x: (dim,), h: (hid,) -> (hid,).  Matches torch.nn.GRUCell semantics."""
    kp, tn = meta["kp"], meta["tn"]
    itemsize = w_bm.dtype.itemsize
    dbuf_weight = 2 * 3 * kp * tn * itemsize       # true double-buffered weight bytes
    vmem_limit = int(min(meta["vmem_cap_bytes"],
                         max(16 * _MIB, dbuf_weight + 8 * _MIB)))
    return _gru_cell_forward_impl(x, h, w_bm, b_packed,
                                  dim_p=meta["dim_p"],
                                  vmem_limit_bytes=vmem_limit)


def _reference_gru(x, h, weight_ih, weight_hh, bias_ih, bias_hh):
    """Pure-JAX reference with torch.nn.GRUCell's native parameter layout."""
    hid = h.shape[0]
    gi = weight_ih @ x + bias_ih
    gh = weight_hh @ h + bias_hh
    i_r, i_z, i_n = gi[:hid], gi[hid:2 * hid], gi[2 * hid:]
    h_r, h_z, h_n = gh[:hid], gh[hid:2 * hid], gh[2 * hid:]
    r = jax.nn.sigmoid(i_r + h_r)
    z = jax.nn.sigmoid(i_z + h_z)
    n = jnp.tanh(i_n + r * h_n)
    return (1.0 - z) * n + z * h


def _run_case(case_idx, dim, hid, weights_dtype=None, atol=1e-5, rtol=1e-5):
    key = jax.random.fold_in(jax.random.PRNGKey(0), case_idx)
    kx, kh, k1, k2, k3, k4 = jax.random.split(key, 6)

    scale = 1.0 / (hid ** 0.5)
    # torch.nn.GRUCell(dim, hid)-shaped parameters (native torch layout).
    weight_ih = jax.random.uniform(k1, (3 * hid, dim), jnp.float32, -scale, scale)
    weight_hh = jax.random.uniform(k2, (3 * hid, hid), jnp.float32, -scale, scale)
    bias_ih = jax.random.uniform(k3, (3 * hid,), jnp.float32, -scale, scale)
    bias_hh = jax.random.uniform(k4, (3 * hid,), jnp.float32, -scale, scale)

    x = jax.random.normal(kx, (dim,), jnp.float32)
    h = jax.random.normal(kh, (hid,), jnp.float32)

    w_bm, b_packed, meta = prepare_gru_params(
        weight_ih, weight_hh, bias_ih, bias_hh, weights_dtype=weights_dtype)

    out = gru_cell_forward(x, h, w_bm, b_packed, meta)
    jax.block_until_ready(out)

    ref = _reference_gru(x, h, weight_ih, weight_hh, bias_ih, bias_hh)
    assert out.shape == (hid,)
    assert jnp.allclose(out, ref, atol=atol, rtol=rtol), (
        f"mismatch vs reference (dim={dim}, hid={hid}, wdt={weights_dtype})")


if __name__ == "__main__":
    # Small shape matching the module's intent (single feature/hidden vector).
    _run_case(0, dim=32, hid=32)
    # Larger hidden size to exercise the lane-dense N-tiled grid (2 blocks of 128).
    _run_case(1, dim=64, hid=256)
    # Non-8-multiple dim / non-128-multiple hid exercises the zero-padding path.
    _run_case(2, dim=20, hid=96)
    # bf16 weight-streaming path (halves the HBM weight stream); looser tolerance.
    _run_case(3, dim=64, hid=256, weights_dtype=jnp.bfloat16, atol=5e-2, rtol=5e-2)

    print("KERNEL_OK")
</pallas_src>

<mosaic_0001>
module attributes {stable_mosaic.version = 11 : i64} {
  func.func @_gru_cell_kernel(%arg0: i32, %arg1: memref<1x160xf32, #tpu.memory_space<vmem>>, %arg2: memref<1x32xf32, #tpu.memory_space<vmem>>, %arg3: memref<1x128xf32, #tpu.memory_space<vmem>>, %arg4: memref<1x3x160x128xf32, #tpu.memory_space<vmem>>, %arg5: memref<4x1x128xf32, #tpu.memory_space<vmem>>, %arg6: memref<1x128xf32, #tpu.memory_space<vmem>>) attributes {dimension_semantics = [#tpu.dimension_semantics<parallel>], iteration_bounds = array<i64: 1>, scalar_prefetch = 0 : i64, scratch_operands = 0 : i64, tpu.core_type = #tpu.core_type<tc>, window_params = [{pipeline_mode = #tpu.pipeline_mode<synchronous>, transform_indices = @transform_0, window_bounds = array<i64: 1, 160>}, {pipeline_mode = #tpu.pipeline_mode<synchronous>, transform_indices = @transform_1, window_bounds = array<i64: 1, 32>}, {pipeline_mode = #tpu.pipeline_mode<synchronous>, transform_indices = @transform_2, window_bounds = array<i64: 1, 128>}, {transform_indices = @transform_3, window_bounds = array<i64: 1, 3, 160, 128>}, {transform_indices = @transform_4, window_bounds = array<i64: 4, 1, 128>}, {transform_indices = @transform_5, window_bounds = array<i64: 1, 128>}]} {
    %c0 = arith.constant 0 : index
    %c0_0 = arith.constant 0 : index
    %0 = vector.load %arg1[%c0, %c0_0] : memref<1x160xf32, #tpu.memory_space<vmem>>, vector<1x160xf32>
    %c0_1 = arith.constant 0 : index
    %c0_2 = arith.constant 0 : index
    %1 = vector.load %arg2[%c0_1, %c0_2] : memref<1x32xf32, #tpu.memory_space<vmem>>, vector<1x32xf32>
    %c0_3 = arith.constant 0 : index
    %c0_4 = arith.constant 0 : index
    %2 = vector.load %arg3[%c0_3, %c0_4] : memref<1x128xf32, #tpu.memory_space<vmem>>, vector<1x128xf32>
    %c0_5 = arith.constant 0 : index
    %c0_6 = arith.constant 0 : index
    %c0_7 = arith.constant 0 : index
    %c0_8 = arith.constant 0 : index
    %3 = vector.load %arg4[%c0_5, %c0_6, %c0_7, %c0_8] : memref<1x3x160x128xf32, #tpu.memory_space<vmem>>, vector<1x1x160x128xf32>
    %4 = vector.shape_cast %3 : vector<1x1x160x128xf32> to vector<160x128xf32>
    %cst = arith.constant dense<0.000000e+00> : vector<1x128xf32>
    %5 = tpu.matmul %0, %4, %cst {dimension_numbers = #tpu.dot_dimension_numbers<[1], [0], [0], [1], [0, 0, 1, 1], [], []>} : vector<1x160xf32>, vector<160x128xf32>, vector<1x128xf32> -> vector<1x128xf32>
    %c0_9 = arith.constant 0 : index
    %c1 = arith.constant 1 : index
    %c0_10 = arith.constant 0 : index
    %c0_11 = arith.constant 0 : index
    %6 = vector.load %arg4[%c0_9, %c1, %c0_10, %c0_11] : memref<1x3x160x128xf32, #tpu.memory_space<vmem>>, vector<1x1x160x128xf32>
    %7 = vector.shape_cast %6 : vector<1x1x160x128xf32> to vector<160x128xf32>
    %cst_12 = arith.constant dense<0.000000e+00> : vector<1x128xf32>
    %8 = tpu.matmul %0, %7, %cst_12 {dimension_numbers = #tpu.dot_dimension_numbers<[1], [0], [0], [1], [0, 0, 1, 1], [], []>} : vector<1x160xf32>, vector<160x128xf32>, vector<1x128xf32> -> vector<1x128xf32>
    %c0_13 = arith.constant 0 : index
    %c2 = arith.constant 2 : index
    %c0_14 = arith.constant 0 : index
    %c0_15 = arith.constant 0 : index
    %9 = vector.load %arg4[%c0_13, %c2, %c0_14, %c0_15] : memref<1x3x160x128xf32, #tpu.memory_space<vmem>>, vector<1x1x160x128xf32>
    %10 = vector.shape_cast %9 : vector<1x1x160x128xf32> to vector<160x128xf32>
    %11 = vector.extract_strided_slice %10 {offsets = [0, 0], sizes = [32, 128], strides = [1, 1]} : vector<160x128xf32> to vector<32x128xf32>
    %cst_16 = arith.constant dense<0.000000e+00> : vector<1x128xf32>
    %12 = tpu.matmul %1, %11, %cst_16 {dimension_numbers = #tpu.dot_dimension_numbers<[1], [0], [0], [1], [0, 0, 1, 1], [], []>} : vector<1x32xf32>, vector<32x128xf32>, vector<1x128xf32> -> vector<1x128xf32>
    %13 = vector.extract_strided_slice %10 {offsets = [32, 0], sizes = [128, 128], strides = [1, 1]} : vector<160x128xf32> to vector<128x128xf32>
    %cst_17 = arith.constant dense<0.000000e+00> : vector<1x128xf32>
    %14 = tpu.matmul %2, %13, %cst_17 {dimension_numbers = #tpu.dot_dimension_numbers<[1], [0], [0], [1], [0, 0, 1, 1], [], []>} : vector<1x128xf32>, vector<128x128xf32>, vector<1x128xf32> -> vector<1x128xf32>
    %c0_18 = arith.constant 0 : index
    %c0_19 = arith.constant 0 : index
    %c0_20 = arith.constant 0 : index
    %15 = vector.load %arg5[%c0_18, %c0_19, %c0_20] : memref<4x1x128xf32, #tpu.memory_space<vmem>>, vector<1x1x128xf32>
    %16 = vector.shape_cast %15 : vector<1x1x128xf32> to vector<1x128xf32>
    %c1_21 = arith.constant 1 : index
    %c0_22 = arith.constant 0 : index
    %c0_23 = arith.constant 0 : index
    %17 = vector.load %arg5[%c1_21, %c0_22, %c0_23] : memref<4x1x128xf32, #tpu.memory_space<vmem>>, vector<1x1x128xf32>
    %18 = vector.shape_cast %17 : vector<1x1x128xf32> to vector<1x128xf32>
    %c2_24 = arith.constant 2 : index
    %c0_25 = arith.constant 0 : index
    %c0_26 = arith.constant 0 : index
    %19 = vector.load %arg5[%c2_24, %c0_25, %c0_26] : memref<4x1x128xf32, #tpu.memory_space<vmem>>, vector<1x1x128xf32>
    %20 = vector.shape_cast %19 : vector<1x1x128xf32> to vector<1x128xf32>
    %c3 = arith.constant 3 : index
    %c0_27 = arith.constant 0 : index
    %c0_28 = arith.constant 0 : index
    %21 = vector.load %arg5[%c3, %c0_27, %c0_28] : memref<4x1x128xf32, #tpu.memory_space<vmem>>, vector<1x1x128xf32>
    %22 = vector.shape_cast %21 : vector<1x1x128xf32> to vector<1x128xf32>
    %23 = arith.addf %5, %16 : vector<1x128xf32>
    %24 = arith.negf %23 : vector<1x128xf32>
    %25 = math.exp %24 : vector<1x128xf32>
    %cst_29 = arith.constant 1.000000e+00 : f32
    %26 = vector.broadcast %cst_29 : f32 to vector<1x128xf32>
    %27 = arith.addf %26, %25 : vector<1x128xf32>
    %28 = arith.divf %26, %27 : vector<1x128xf32>
    %29 = arith.addf %8, %18 : vector<1x128xf32>
    %30 = arith.negf %29 : vector<1x128xf32>
    %31 = math.exp %30 : vector<1x128xf32>
    %cst_30 = arith.constant 1.000000e+00 : f32
    %32 = vector.broadcast %cst_30 : f32 to vector<1x128xf32>
    %33 = arith.addf %32, %31 : vector<1x128xf32>
    %34 = arith.divf %32, %33 : vector<1x128xf32>
    %35 = arith.addf %12, %20 : vector<1x128xf32>
    %36 = arith.addf %14, %22 : vector<1x128xf32>
    %37 = arith.mulf %28, %36 : vector<1x128xf32>
    %38 = arith.addf %35, %37 : vector<1x128xf32>
    %39 = math.tanh %38 : vector<1x128xf32>
    %c128_i32 = arith.constant 128 : i32
    %40 = arith.muli %arg0, %c128_i32 : i32
    %41 = tpu.assume_multiple %40, 128 : i32
    %c0_31 = arith.constant 0 : index
    %42 = arith.index_cast %41 : i32 to index
    %43 = vector.load %arg3[%c0_31, %42] : memref<1x128xf32, #tpu.memory_space<vmem>>, vector<1x128xf32>
    %cst_32 = arith.constant 1.000000e+00 : f32
    %44 = vector.broadcast %cst_32 : f32 to vector<1x128xf32>
    %45 = arith.subf %44, %34 : vector<1x128xf32>
    %46 = arith.mulf %45, %39 : vector<1x128xf32>
    %47 = arith.mulf %34, %43 : vector<1x128xf32>
    %48 = arith.addf %46, %47 : vector<1x128xf32>
    %c0_33 = arith.constant 0 : index
    %c0_34 = arith.constant 0 : index
    %49 = vector.load %arg6[%c0_33, %c0_34] : memref<1x128xf32, #tpu.memory_space<vmem>>, vector<1x128xf32>
    tpu.vector_store %arg6[%c0_33, %c0_34], %48 {strides = array<i32>} : memref<1x128xf32, #tpu.memory_space<vmem>>, vector<1x128xf32>,
    return
  }
  func.func @transform_0(%arg0: i32) -> (i32, i32) {
    %c0_i32 = arith.constant 0 : i32
    %c0_i32_0 = arith.constant 0 : i32
    %c0_i32_1 = arith.constant 0 : i32
    return %c0_i32, %c0_i32_0 : i32, i32
  }
  func.func @transform_1(%arg0: i32) -> (i32, i32) {
    %c0_i32 = arith.constant 0 : i32
    %c0_i32_0 = arith.constant 0 : i32
    %c0_i32_1 = arith.constant 0 : i32
    return %c0_i32, %c0_i32_0 : i32, i32
  }
  func.func @transform_2(%arg0: i32) -> (i32, i32) {
    %c0_i32 = arith.constant 0 : i32
    %c0_i32_0 = arith.constant 0 : i32
    %c0_i32_1 = arith.constant 0 : i32
    return %c0_i32, %c0_i32_0 : i32, i32
  }
  func.func @transform_3(%arg0: i32) -> (i32, i32, i32, i32) {
    %c0_i32 = arith.constant 0 : i32
    %c0_i32_0 = arith.constant 0 : i32
    %c0_i32_1 = arith.constant 0 : i32
    %c0_i32_2 = arith.constant 0 : i32
    return %arg0, %c0_i32, %c0_i32_0, %c0_i32_1 : i32, i32, i32, i32
  }
  func.func @transform_4(%arg0: i32) -> (i32, i32, i32) {
    %c0_i32 = arith.constant 0 : i32
    %c0_i32_0 = arith.constant 0 : i32
    %c0_i32_1 = arith.constant 0 : i32
    return %c0_i32, %c0_i32_0, %arg0 : i32, i32, i32
  }
  func.func @transform_5(%arg0: i32) -> (i32, i32) {
    %c0_i32 = arith.constant 0 : i32
    %c0_i32_0 = arith.constant 0 : i32
    return %c0_i32, %arg0 : i32, i32
  }
}

</mosaic_0001>

<bundles_post_ra>
// kernel: _gru_cell_forward_impl.1
= control target key start
LH: loop header
LB: loop body
LE: loop exit
PB: predicated region body
PF: predicated region fallthrough
CT: control target
= control target key end

     0   :  { %10 = vsyncpa [#allocation3], 0  ;;  %s639_s18 = smov [#allocation2]   ;;  %s755_s0 = inlined_call_operand.vmem [shape: f32[1,160], index: 0, kind: input, shape index: {}]   ;;  %s756_s1 = inlined_call_operand.vmem [shape: f32[1,32], index: 1, kind: input, shape index: {}]   ;;  %s757_s2 = inlined_call_operand.vmem [shape: f32[1,128], index: 2, kind: input, shape index: {}]   ;;  %s758_s3 = inlined_call_operand.hbm [shape: f32[1,3,160,128], index: 3, kind: input, shape index: {}]   ;;  %s759_s4 = inlined_call_operand.vmem [shape: f32[4,1,128], index: 4, kind: input, shape index: {}]   ;;  %s760_s5 = inlined_call_operand.vmem [shape: f32[1,128], index: 5, kind: output, shape index: {}]  }
   0x1   :  { %s22_s19 = sshll.u32 %s639_s18, 4  ;;  %s615_s22 = scalar_lea.hbm %s758_s3, 7680  ;;  %s23_s19 = int_to_ptr.vmem [resolvable:$true] %s22_s19 }
   0x2   :  { %p616_p0 = scmp.ne.s32.totalorder %s758_s3, %s615_s22  ;;  %p619_p1 = scmp.lt.u32.totalorder %s615_s22, %s758_s3 }
   0x4   :  { %p621_p2 = pnand %p619_p1, %p616_p0 }
   0x6   :  { %624 = shalt.err (!%p621_p2)
}
   0x7   :  { %s625_s27 = scalar_lea.vmem %s23_s19, 7680  ;;  %p630_p4 = scmp.lt.s32.totalorder %s23_s19, %s23_s19 }
   0x8   :  { %p626_p3 = scmp.ne.s32.totalorder %s23_s19, %s625_s27  ;;  %p631_p5 = scmp.lt.s32.totalorder %s625_s27, %s625_s27 }
   0xa   :  { %p632_p6 = por %p631_p5, %p630_p4 }
   0xc   :  { %p633_p7 = pnand %p632_p6, %p626_p3 }
   0xe   :  { %636 = shalt.err (!%p633_p7)
}
   0xf   :  { %s640_s28 = smov 128   ;;  %s641_s29 = smov 8  }
  0x10   :  { %28 = dma.hbm_to_vmem [thread:$0]  %s758_s3, 7680, %s23_s19, [#allocation3], %s640_s28, %s640_s28, %s641_s29  }
  0x11   :  { %637 = dma.done.wait [#allocation3], 7680  }
  0x12   :  { %638 = vsyncadd [#allocation3], 4294959616  ;;  %v642_v0 = vmov 0.0|0.0   ;;  %v58_v1 = vld [vmem:[#allocation2 + $0xa0] sm:$0xff]  ;;  %v59_v2 = vld [vmem:[#allocation2 + $0xa8] sm:$0xff]  ;;  %v107_v8 = vlaneseq  ;;  %vm116_vm0 = vcmask 261120  }
  0x13   :  { %539 = vmatprep.subr.bf16.mxu1 %v642_v0  ;;  %509 = vmatprep.subr.bf16.mxu0 %v642_v0  ;;  %v60_v3 = vld [vmem:[#allocation2 + $0xb0] sm:$0xff]  ;;  %v540_v4 = vpack.c.bf16 %v59_v2, %v58_v1  ;;  %v61_v5 = vld [vmem:[#allocation2 + $0xb8] sm:$0xff]  ;;  %v37_v6 = vld [vmem:[#allocation2] sm:$0xff]  ;;  %vm643_vm1 = vmmov 0  }
  0x14   :  { %v38_v7 = vld [vmem:[#allocation2 + $0x8] sm:$0xff]  ;;  %v39_v10 = vld [vmem:[#allocation2 + $0x10] sm:$0xff]  ;;  %v543_v11 = vpack.c.bf16 %v61_v5, %v60_v3  ;;  %v40_v12 = vld [vmem:[#allocation2 + $0x18] sm:$0xff]  ;;  %v691_v18 = vshrl.u32 %v107_v8, 7 }
  0x15   :  { %v510_v9 = vpack.c.bf16 %v38_v7, %v37_v6  ;;  %541 = vmatpush1.bf16.msra.mxu1 %v540_v4  ;;  %v62_v13 = vld [vmem:[#allocation2 + $0xc0] sm:$0xff]  ;;  %v63_v14 = vld [vmem:[#allocation2 + $0xc8] sm:$0xff]  ;;  %v513_v15 = vpack.c.bf16 %v40_v12, %v39_v10  ;;  %v64_v20 = vld [vmem:[#allocation2 + $0xd0] sm:$0xff] }
  0x16   :  { %542 = vmatprep.subr.bf16.mxu1 %v642_v0  ;;  %v41_v16 = vld [vmem:[#allocation2 + $0x20] sm:$0xff]  ;;  %v42_v17 = vld [vmem:[#allocation2 + $0x28] sm:$0xff]  ;;  %v546_v19 = vpack.c.bf16 %v63_v14, %v62_v13  ;;  %v65_v21 = vld [vmem:[#allocation2 + $0xd8] sm:$0xff]  ;;  %v113_v25 = vsub.s32 1, %v691_v18  ;;  %v109_v1 = vsub.s32 0, %v691_v18 }
  0x17   :  { %511 = vmatpush1.bf16.msra.mxu0 %v510_v9  ;;  %v516_v22 = vpack.c.bf16 %v42_v17, %v41_v16  ;;  %v43_v23 = vld [vmem:[#allocation2 + $0x30] sm:$0xff]  ;;  %v44_v24 = vld [vmem:[#allocation2 + $0x38] sm:$0xff]  ;;  %v549_v26 = vpack.c.bf16 %v65_v21, %v64_v20  ;;  %v66_v27 = vld [vmem:[#allocation2 + $0xe0] sm:$0xff] }
  0x18   :  { %512 = vmatprep.subr.bf16.mxu0 %v642_v0  ;;  %v67_v28 = vld [vmem:[#allocation2 + $0xe8] sm:$0xff]  ;;  %v519_v29 = vpack.c.bf16 %v44_v24, %v43_v23  ;;  %v700_v30 = vld [vmem:[%s755_s0] sm:$0x3]  ;;  %v68_v35 = vld [vmem:[#allocation2 + $0xf0] sm:$0xff] }
  0x19   :  { %544 = vmatpush1.bf16.msra.mxu1 %v543_v11  ;;  %v45_v31 = vld [vmem:[#allocation2 + $0x40] sm:$0xff]  ;;  %v46_v32 = vld [vmem:[#allocation2 + $0x48] sm:$0xff]  ;;  %v114_v33 = vrot.slane %v700_v30, %v113_v25  ;;  %v552_v34 = vpack.c.bf16 %v67_v28, %v66_v27  ;;  %v69_v36 = vld [vmem:[#allocation2 + $0xf8] sm:$0xff]  ;;  %v110_v8 = vrot.slane %v700_v30, %v109_v1 }
  0x1a   :  { %545 = vmatprep.subr.bf16.mxu1 %v642_v0  ;;  %v522_v37 = vpack.c.bf16 %v46_v32, %v45_v31  ;;  %v47_v38 = vld [vmem:[#allocation2 + $0x50] sm:$0xff]  ;;  %v48_v39 = vld [vmem:[#allocation2 + $0x58] sm:$0xff]  ;;  %v555_v40 = vpack.c.bf16 %v69_v36, %v68_v35  ;;  %v70_v41 = vld [vmem:[#allocation2 + $0x100] sm:$0xff] }
  0x1b   :  { %514 = vmatpush1.bf16.msra.mxu0 %v513_v15  ;;  %438 = vmatprep.mubr.msk.f32.mxu1 %vm116_vm0, %v114_v33  ;;  %v71_v42 = vld [vmem:[#allocation2 + $0x108] sm:$0xff]  ;;  %v525_v43 = vpack.c.bf16 %v48_v39, %v47_v38  ;;  %v49_v44 = vld [vmem:[#allocation2 + $0x60] sm:$0xff]  ;;  %v72_v47 = vld [vmem:[#allocation2 + $0x110] sm:$0xff] }
  0x1c   :  { %515 = vmatprep.subr.bf16.mxu0 %v642_v0  ;;  %436 = vmatprep.mubr.msk.f32.mxu0 %vm116_vm0, %v114_v33  ;;  %v50_v45 = vld [vmem:[#allocation2 + $0x68] sm:$0xff]  ;;  %v558_v46 = vpack.c.bf16 %v71_v42, %v70_v41  ;;  %v73_v48 = vld [vmem:[#allocation2 + $0x118] sm:$0xff]  ;;  %v51_v50 = vld [vmem:[#allocation2 + $0x70] sm:$0xff] }
  0x1d   :  { %547 = vmatpush1.bf16.msra.mxu1 %v546_v19  ;;  %v528_v49 = vpack.c.bf16 %v50_v45, %v49_v44  ;;  %v52_v51 = vld [vmem:[#allocation2 + $0x78] sm:$0xff]  ;;  %v561_v52 = vpack.c.bf16 %v73_v48, %v72_v47  ;;  %v74_v53 = vld [vmem:[#allocation2 + $0x120] sm:$0xff]  ;;  %v75_v54 = vld [vmem:[#allocation2 + $0x128] sm:$0xff]  ;;  %v644_v19 = vmov 0.0  }
  0x1e   :  { %548 = vmatprep.subr.bf16.mxu1 %v642_v0  ;;  %v531_v55 = vpack.c.bf16 %v52_v51, %v51_v50  ;;  %v53_v56 = vld [vmem:[#allocation2 + $0x80] sm:$0xff]  ;;  %v54_v57 = vld [vmem:[#allocation2 + $0x88] sm:$0xff]  ;;  %v564_v58 = vpack.c.bf16 %v75_v54, %v74_v53  ;;  %v76_v59 = vld [vmem:[#allocation2 + $0x130] sm:$0xff] }
  0x1f   :  { %517 = vmatpush1.bf16.msra.mxu0 %v516_v22  ;;  %v77_v60 = vld [vmem:[#allocation2 + $0x138] sm:$0xff]  ;;  %v534_v61 = vpack.c.bf16 %v54_v57, %v53_v56  ;;  %v55_v62 = vld [vmem:[#allocation2 + $0x90] sm:$0xff]  ;;  %v83_v3 = vld [vmem:[#allocation2 + $0x160] sm:$0xff] }
  0x20   :  { %518 = vmatprep.subr.bf16.mxu0 %v642_v0  ;;  %v56_v63 = vld [vmem:[#allocation2 + $0x98] sm:$0xff]  ;;  %v567_v2 = vpack.c.bf16 %v77_v60, %v76_v59  ;;  %v84_v4 = vld [vmem:[#allocation2 + $0x168] sm:$0xff]  ;;  %v79_v6 = vld [vmem:[#allocation2 + $0x140] sm:$0xff] }
  0x21   :  { %550 = vmatpush1.bf16.msra.mxu1 %v549_v26  ;;  %v537_v5 = vpack.c.bf16 %v56_v63, %v55_v62  ;;  %v80_v7 = vld [vmem:[#allocation2 + $0x148] sm:$0xff]  ;;  %v576_v9 = vpack.c.bf16 %v84_v4, %v83_v3  ;;  %v85_v10 = vld [vmem:[#allocation2 + $0x170] sm:$0xff]  ;;  %v86_v11 = vld [vmem:[#allocation2 + $0x178] sm:$0xff] }
  0x22   :  { %551 = vmatprep.subr.bf16.mxu1 %v642_v0  ;;  %v570_v12 = vpack.c.bf16 %v80_v7, %v79_v6  ;;  %v81_v13 = vld [vmem:[#allocation2 + $0x150] sm:$0xff]  ;;  %v82_v14 = vld [vmem:[#allocation2 + $0x158] sm:$0xff]  ;;  %v579_v15 = vpack.c.bf16 %v86_v11, %v85_v10  ;;  %v87_v16 = vld [vmem:[#allocation2 + $0x180] sm:$0xff] }
  0x23   :  { %520 = vmatpush1.bf16.msra.mxu0 %v519_v29  ;;  %v88_v17 = vld [vmem:[#allocation2 + $0x188] sm:$0xff]  ;;  %v573_v18 = vpack.c.bf16 %v82_v14, %v81_v13  ;;  %v89_v21 = vld [vmem:[#allocation2 + $0x190] sm:$0xff]  ;;  %v90_v22 = vld [vmem:[#allocation2 + $0x198] sm:$0xff] }
  0x24   :  { %521 = vmatprep.subr.bf16.mxu0 %v642_v0  ;;  %v582_v20 = vpack.c.bf16 %v88_v17, %v87_v16  ;;  %v35_v23 = vld [vmem:[%s756_s1] sm:$0x1]  ;;  %v585_v24 = vpack.c.bf16 %v90_v22, %v89_v21  ;;  %v92_v26 = vld [vmem:[#allocation2 + $0x1a8] sm:$0xff]  ;;  %v93_v28 = vld [vmem:[#allocation2 + $0x1b0] sm:$0xff] }
  0x25   :  { %553 = vmatpush1.bf16.msra.mxu1 %v552_v34  ;;  %v91_v25 = vld [vmem:[#allocation2 + $0x1a0] sm:$0xff]  ;;  %v94_v29 = vld [vmem:[#allocation2 + $0x1b8] sm:$0xff]  ;;  %v96_v32 = vld [vmem:[#allocation2 + $0x1c8] sm:$0xff] }
  0x26   :  { %554 = vmatprep.subr.bf16.mxu1 %v642_v0  ;;  %v588_v27 = vpack.c.bf16 %v92_v26, %v91_v25  ;;  %v591_v30 = vpack.c.bf16 %v94_v29, %v93_v28  ;;  %v95_v31 = vld [vmem:[#allocation2 + $0x1c0] sm:$0xff]  ;;  %v97_v34 = vld [vmem:[#allocation2 + $0x1d0] sm:$0xff]  ;;  %v98_v35 = vld [vmem:[#allocation2 + $0x1d8] sm:$0xff] }
  0x27   :  { %523 = vmatpush1.bf16.msra.mxu0 %v522_v37  ;;  %v594_v33 = vpack.c.bf16 %v96_v32, %v95_v31  ;;  %v597_v36 = vpack.c.bf16 %v98_v35, %v97_v34  ;;  %v36_v37 = vld [vmem:[%s757_s2] sm:$0x1]  ;;  %v434_v53 = vld [vmem:[%s759_s4 + $0x2] sm:$0x1] }
  0x28   :  { %524 = vmatprep.subr.bf16.mxu0 %v642_v0  ;;  %v99_v38 = vld [vmem:[%s759_s4] sm:$0x1] }
  0x29   :  { %556 = vmatpush1.bf16.msra.mxu1 %v555_v40  ;;  %v421_v63 = vld [vmem:[%s757_s2] sm:$0x1] }
  0x2a   :  { %557 = vmatprep.subr.bf16.mxu1 %v642_v0 }
  0x2b   :  { %526 = vmatpush1.bf16.msra.mxu0 %v525_v43 }
  0x2c   :  { %527 = vmatprep.subr.bf16.mxu0 %v642_v0 }
  0x2d   :  { %559 = vmatpush1.bf16.msra.mxu1 %v558_v46 }
  0x2e   :  { %560 = vmatprep.subr.bf16.mxu1 %v642_v0 }
  0x2f   :  { %529 = vmatpush1.bf16.msra.mxu0 %v528_v49 }
  0x30   :  { %530 = vmatprep.subr.bf16.mxu0 %v642_v0 }
  0x31   :  { %562 = vmatpush1.bf16.msra.mxu1 %v561_v52  ;;  %v435_v52 = vld [vmem:[%s759_s4 + $0x3] sm:$0x1] }
  0x32   :  { %563 = vmatprep.subr.bf16.mxu1 %v642_v0 }
  0x33   :  { %532 = vmatpush1.bf16.msra.mxu0 %v531_v55 }
  0x34   :  { %533 = vmatprep.subr.bf16.mxu0 %v642_v0 }
  0x35   :  { %565 = vmatpush1.bf16.msra.mxu1 %v564_v58 }
  0x36   :  { %566 = vmatprep.subr.bf16.mxu1 %v642_v0 }
  0x37   :  { %535 = vmatpush1.bf16.msra.mxu0 %v534_v61 }
  0x38   :  { %536 = vmatprep.subr.bf16.mxu0 %v642_v0 }
  0x39   :  { %568 = vmatpush1.bf16.msra.mxu1 %v567_v2 }
  0x3a   :  { %575 = vmatprep.subr.bf16.mxu1 %v642_v0 }
  0x3b   :  { %538 = vmatpush1.bf16.msra.mxu0 %v537_v5 }
  0x3c   :  { %569 = vmatprep.subr.bf16.mxu0 %v642_v0  ;;  %260 = vmatmul.mubr.f32.vlgmr.msra.gmra.mrb[0].mxu1 %v110_v8 }
  0x3d   :  { %577 = vmatpush3.bf16.msra.mxu1 %v576_v9  ;;  %506 = vmatprep.mubr.msk.f32.mxu1 %vm643_vm1, %v644_v19 }
  0x3e   :  { %184 = vmatmul.mubr.f32.vlgmr.msra.gmra.mrb[0].mxu0 %v110_v8  ;;  %578 = vmatprep.subr.bf16.mxu1 %v642_v0 }
  0x3f   :  { %571 = vmatpush3.bf16.msra.mxu0 %v570_v12  ;;  %471 = vmatprep.mubr.msk.f32.mxu0 %vm643_vm1, %v644_v19 }
  0x40   :  { %572 = vmatprep.subr.bf16.mxu0 %v642_v0 }
  0x41   :  { %580 = vmatpush3.bf16.msra.mxu1 %v579_v15 }
  0x42   :  { %581 = vmatprep.subr.bf16.mxu1 %v642_v0 }
  0x43   :  { %574 = vmatpush3.bf16.msra.mxu0 %v573_v18 }
  0x45   :  { %583 = vmatpush3.bf16.msra.mxu1 %v582_v20 }
  0x46   :  { %472 = vmatmul.mubr.msk.f32.vlgmr.msra.gmra.mrb[2].mxu0 %vm116_vm0, %v35_v23  ;;  %584 = vmatprep.subr.bf16.mxu1 %v642_v0 }
  0x49   :  { %586 = vmatpush3.bf16.msra.mxu1 %v585_v24 }
  0x4a   :  { %587 = vmatprep.subr.bf16.mxu1 %v642_v0 }
  0x4d   :  { %589 = vmatpush3.bf16.msra.mxu1 %v588_v27 }
  0x4e   :  { %590 = vmatprep.subr.bf16.mxu1 %v642_v0 }
  0x51   :  { %592 = vmatpush3.bf16.msra.mxu1 %v591_v30 }
  0x52   :  { %593 = vmatprep.subr.bf16.mxu1 %v642_v0 }
  0x55   :  { %595 = vmatpush3.bf16.msra.mxu1 %v594_v33 }
  0x56   :  { %596 = vmatprep.subr.bf16.mxu1 %v642_v0  ;;  %v433_v0 = vld [vmem:[%s759_s4 + $0x1] sm:$0x1] }
  0x59   :  { %598 = vmatpush3.bf16.msra.mxu1 %v597_v36 }
  0x5c   :  { %507 = vmatmul.mubr.f32.vlgmr.msra.gmra.mrb[2].mxu1 %v36_v37 }
 0x10f   :  { %v261_v39 = vpop.f32.mrb[0].mxu1 }
 0x110   :  { %v263_v40 = vpop.f32.mrb[1].mxu1  ;;  %v262_v46 = vadd.f32 %v433_v0, %v261_v39 }
 0x111   :  { %v185_v41 = vpop.f32.mrb[0].mxu0 }
 0x112   :  { %v186_v42 = vadd.f32 %v185_v41, %v99_v38  ;;  %v187_v43 = vpop.f32.mrb[1].mxu0  ;;  %v439_v48 = vmul.f32 -1.442695, %v262_v46 }
 0x114   :  { %v437_v44 = vmul.f32 -1.442695, %v186_v42 }
 0x116   :  { %605 = vpow2.f32 %v437_v44 }
 0x117   :  { %607 = vpow2.f32 %v439_v48 }
 0x119   :  { %v340_v45 = vpop.f32.mrb[2].mxu0 }
 0x11a   :  { %v473_v47 = vpop.f32.mrb[3].mxu0  ;;  %v341_v58 = vadd.f32 %v434_v53, %v340_v45 }
 0x120   :  { %v606_v49 = vpop.eup %605 }
 0x121   :  { %v192_v50 = vadd.f32 1.0, %v606_v49  ;;  %v608_v51 = vpop.eup %607 }
 0x122   :  { %v268_v54 = vadd.f32 1.0, %v608_v51 }
 0x123   :  { %609 = vrcp.f32 %v192_v50 }
 0x124   :  { %611 = vrcp.f32 %v268_v54 }
 0x12d   :  { %v610_v55 = vpop.eup %609 }
 0x12e   :  { %v612_v62 = vpop.eup %611 }
 0x12f   :  { %v410_v56 = vpop.f32.mrb[2].mxu1  ;;  %v422_v1 = vsub.f32 1.0, %v612_v62  ;;  %v424_v3 = vmul.f32 %v612_v62, %v421_v63 }
 0x130   :  { %v411_v57 = vadd.f32 %v435_v52, %v410_v56  ;;  %v508_v59 = vpop.f32.mrb[3].mxu1 }
 0x132   :  { %v414_v60 = vmul.f32 %v610_v55, %v411_v57 }
 0x134   :  { %v415_v61 = vadd.f32 %v414_v60, %v341_v58 }
 0x136   :  { %613 = vtanh.f32 %v415_v61 }
 0x140   :  { %v614_v2 = vpop.eup %613 }
 0x141   :  { %v423_v4 = vmul.f32 %v614_v2, %v422_v1 }
 0x143   :  { %v425_v5 = vadd.f32 %v424_v3, %v423_v4 }
 0x145   :  { %426 = vst [vmem:[%s760_s5] sm:$0x1] %v425_v5 }
 0x146   :  { %431 = vsyncpa [#allocation3], 1 }

</bundles_post_ra>
